<compile_context>
chip_gen: v7x
topology: tpu7x:2x2x1
jax: 0.10.0
libtpu: 0.0.40
codegen_flags: <defaults>
</compile_context>

<pallas_src>
import functools

import jax
import jax.numpy as jnp
from jax.experimental import pallas as pl
from jax.experimental.pallas import tpu as pltpu


# ------------------------------ kernel body ----------------------------------
def _layernorm_nchw_kernel(x_ref, w_ref, b_ref, o_ref, *, eps, inv_c):
    # x_ref/o_ref: (TB, C, TL)   w_ref/b_ref: (C, 1) float32
    x = x_ref[...].astype(jnp.float32)                       # lanes = spatial
    mean = jnp.sum(x, axis=1, keepdims=True) * inv_c         # (TB, 1, TL)
    diff = x - mean
    var = jnp.sum(diff * diff, axis=1, keepdims=True) * inv_c
    rstd = jax.lax.rsqrt(var + eps)                          # EUP slot
    w = w_ref[...][None]                                     # (1, C, 1) broadcast
    b = b_ref[...][None]
    o_ref[...] = (diff * rstd * w + b).astype(o_ref.dtype)


# ------------------------------ tile picking ----------------------------------
def _pick_tiles(B, C, HW, itemsize, budget_bytes):
    """Return (TB, TL): batch-fold count and lane tile width.

    If a whole image (C, HW) fits the per-block budget, keep TL = HW and fold
    several images per step so each grid step moves enough bytes to amortize the
    ~0.35us per-step overhead.  Otherwise keep TB=1 and pick the largest
    128-multiple lane tile under budget; the last block is cdiv-ragged (lane
    padding is harmless since the reduction is over channels, not lanes)."""
    img_bytes = C * HW * itemsize
    if img_bytes <= budget_bytes:
        tb = max(1, min(B, budget_bytes // max(img_bytes, 1)))
        return tb, HW
    cap = budget_bytes // max(C * itemsize, 1)
    tl = max((min(cap, HW) // 128) * 128, 128)
    tl = min(tl, HW)  # only hit when HW < 128 -> full-row (always legal) block
    return 1, tl


# -------------------------------- wrapper -------------------------------------
def layernorm_nchw(x, weight, bias, eps=1e-6, *, block_batch=None, lane_tile=None,
                   budget_bytes=8 << 20):
    """Channel LayerNorm over NCHW input, matching the PyTorch module."""
    B, C, H, W = x.shape
    HW = H * W
    xr = x.reshape(B, C, HW)                                 # free, contiguous view
    itemsize = x.dtype.itemsize

    tb_auto, tl_auto = _pick_tiles(B, C, HW, itemsize, budget_bytes)
    TB = block_batch if block_batch is not None else tb_auto
    TL = lane_tile if lane_tile is not None else tl_auto
    grid = (pl.cdiv(B, TB), pl.cdiv(HW, TL))

    tile_bytes = TB * C * TL * itemsize
    # in + out double-buffered, f32 upcast temporaries, weights and slack;
    # clamp at 48 MiB so the v7x part (64 MiB physical VMEM / TC) keeps headroom.
    vmem_limit = int(min(max(6 * tile_bytes + (2 << 20), 16 << 20), 48 << 20))

    cost = pl.CostEstimate(
        flops=8 * B * C * HW,
        transcendentals=B * HW,
        bytes_accessed=2 * B * C * HW * itemsize + 2 * C * 4,
    )

    kern = functools.partial(_layernorm_nchw_kernel, eps=float(eps), inv_c=1.0 / C)
    w32 = weight.astype(jnp.float32).reshape(C, 1)
    b32 = bias.astype(jnp.float32).reshape(C, 1)

    out = pl.pallas_call(
        kern,
        out_shape=jax.ShapeDtypeStruct((B, C, HW), x.dtype),
        grid_spec=pltpu.PrefetchScalarGridSpec(
            num_scalar_prefetch=0,
            grid=grid,
            in_specs=[
                pl.BlockSpec((TB, C, TL), lambda bb, ll: (bb, 0, ll)),
                pl.BlockSpec((C, 1), lambda bb, ll: (0, 0)),
                pl.BlockSpec((C, 1), lambda bb, ll: (0, 0)),
            ],
            out_specs=pl.BlockSpec((TB, C, TL), lambda bb, ll: (bb, 0, ll)),
        ),
        compiler_params=pltpu.CompilerParams(
            dimension_semantics=("parallel", "parallel"),
            vmem_limit_bytes=vmem_limit,
        ),
        cost_estimate=cost,
    )(xr, w32, b32)
    return out.reshape(B, C, H, W)


# ----------------------------- pure-JAX reference -----------------------------
def _layernorm_ref(x, weight, bias, eps=1e-6):
    u = jnp.mean(x, axis=1, keepdims=True)
    s = jnp.mean((x - u) ** 2, axis=1, keepdims=True)
    y = (x - u) / jnp.sqrt(s + eps)
    return weight[None, :, None, None] * y + bias[None, :, None, None]


if __name__ == "__main__":
    key = jax.random.PRNGKey(0)
    kx, kw, kb, kx2 = jax.random.split(key, 4)

    # Small shape consistent with the module (NCHW): batch-fold path, grid (1,1).
    B, C, H, W = 2, 4, 16, 16
    x = jax.random.normal(kx, (B, C, H, W), jnp.float32)
    weight = 1.0 + 0.1 * jax.random.normal(kw, (C,), jnp.float32)
    bias = 0.1 * jax.random.normal(kb, (C,), jnp.float32)

    y = jax.jit(layernorm_nchw)(x, weight, bias)
    jax.block_until_ready(y)
    assert y.shape == (B, C, H, W), y.shape
    ref = _layernorm_ref(x, weight, bias)
    assert jnp.allclose(y, ref, atol=2e-5, rtol=2e-5), float(jnp.max(jnp.abs(y - ref)))

    # Second shape exercising per-image lane tiling with a cdiv-ragged final
    # block: HW = 2880 is not a multiple of the 512-lane tile.
    B2, C2, H2, W2 = 1, 64, 48, 60
    x2 = jax.random.normal(kx2, (B2, C2, H2, W2), jnp.float32)
    w2 = 1.0 + 0.05 * jnp.arange(C2, dtype=jnp.float32)
    b2 = 0.01 * jnp.arange(C2, dtype=jnp.float32)
    y2 = layernorm_nchw(x2, w2, b2, block_batch=1, lane_tile=512)
    jax.block_until_ready(y2)
    ref2 = _layernorm_ref(x2, w2, b2)
    assert jnp.allclose(y2, ref2, atol=2e-5, rtol=2e-5), float(jnp.max(jnp.abs(y2 - ref2)))

    print("KERNEL_OK")
</pallas_src>

<mosaic_0001>
module attributes {stable_mosaic.version = 11 : i64} {
  func.func @_layernorm_nchw_kernel(%arg0: i32, %arg1: i32, %arg2: memref<2x4x256xf32, #tpu.memory_space<vmem>>, %arg3: memref<4x1xf32, #tpu.memory_space<vmem>>, %arg4: memref<4x1xf32, #tpu.memory_space<vmem>>, %arg5: memref<2x4x256xf32, #tpu.memory_space<vmem>>) attributes {dimension_semantics = [#tpu.dimension_semantics<parallel>, #tpu.dimension_semantics<parallel>], iteration_bounds = array<i64: 1, 1>, scalar_prefetch = 0 : i64, scratch_operands = 0 : i64, tpu.core_type = #tpu.core_type<tc>, window_params = [{transform_indices = @transform_0, window_bounds = array<i64: 2, 4, 256>}, {pipeline_mode = #tpu.pipeline_mode<synchronous>, transform_indices = @transform_1, window_bounds = array<i64: 4, 1>}, {pipeline_mode = #tpu.pipeline_mode<synchronous>, transform_indices = @transform_2, window_bounds = array<i64: 4, 1>}, {transform_indices = @transform_3, window_bounds = array<i64: 2, 4, 256>}]} {
    %c0 = arith.constant 0 : index
    %c0_0 = arith.constant 0 : index
    %c0_1 = arith.constant 0 : index
    %0 = vector.load %arg2[%c0, %c0_0, %c0_1] : memref<2x4x256xf32, #tpu.memory_space<vmem>>, vector<2x4x256xf32>
    %cst = arith.constant dense<0.000000e+00> : vector<2x256xf32>
    %1 = vector.multi_reduction <add>, %0, %cst [1] : vector<2x4x256xf32> to vector<2x256xf32>
    %2 = vector.shape_cast %1 : vector<2x256xf32> to vector<2x1x256xf32>
    %cst_2 = arith.constant 2.500000e-01 : f32
    %3 = vector.broadcast %cst_2 : f32 to vector<2x1x256xf32>
    %4 = arith.mulf %2, %3 : vector<2x1x256xf32>
    %5 = vector.broadcast %4 : vector<2x1x256xf32> to vector<2x4x256xf32>
    %6 = arith.subf %0, %5 : vector<2x4x256xf32>
    %7 = arith.mulf %6, %6 : vector<2x4x256xf32>
    %cst_3 = arith.constant dense<0.000000e+00> : vector<2x256xf32>
    %8 = vector.multi_reduction <add>, %7, %cst_3 [1] : vector<2x4x256xf32> to vector<2x256xf32>
    %9 = vector.shape_cast %8 : vector<2x256xf32> to vector<2x1x256xf32>
    %cst_4 = arith.constant 2.500000e-01 : f32
    %10 = vector.broadcast %cst_4 : f32 to vector<2x1x256xf32>
    %11 = arith.mulf %9, %10 : vector<2x1x256xf32>
    %cst_5 = arith.constant 9.99999997E-7 : f32
    %12 = vector.broadcast %cst_5 : f32 to vector<2x1x256xf32>
    %13 = arith.addf %11, %12 : vector<2x1x256xf32>
    %14 = math.rsqrt %13 : vector<2x1x256xf32>
    %c0_6 = arith.constant 0 : index
    %c0_7 = arith.constant 0 : index
    %15 = vector.load %arg3[%c0_6, %c0_7] : memref<4x1xf32, #tpu.memory_space<vmem>>, vector<4x1xf32>
    %16 = vector.shape_cast %15 : vector<4x1xf32> to vector<1x4x1xf32>
    %c0_8 = arith.constant 0 : index
    %c0_9 = arith.constant 0 : index
    %17 = vector.load %arg4[%c0_8, %c0_9] : memref<4x1xf32, #tpu.memory_space<vmem>>, vector<4x1xf32>
    %18 = vector.shape_cast %17 : vector<4x1xf32> to vector<1x4x1xf32>
    %19 = vector.broadcast %14 : vector<2x1x256xf32> to vector<2x4x256xf32>
    %20 = arith.mulf %6, %19 : vector<2x4x256xf32>
    %21 = vector.broadcast %16 : vector<1x4x1xf32> to vector<2x4x256xf32>
    %22 = arith.mulf %20, %21 : vector<2x4x256xf32>
    %23 = vector.broadcast %18 : vector<1x4x1xf32> to vector<2x4x256xf32>
    %24 = arith.addf %22, %23 : vector<2x4x256xf32>
    %c0_10 = arith.constant 0 : index
    %c0_11 = arith.constant 0 : index
    %c0_12 = arith.constant 0 : index
    %25 = vector.load %arg5[%c0_10, %c0_11, %c0_12] : memref<2x4x256xf32, #tpu.memory_space<vmem>>, vector<2x4x256xf32>
    tpu.vector_store %arg5[%c0_10, %c0_11, %c0_12], %24 {strides = array<i32>} : memref<2x4x256xf32, #tpu.memory_space<vmem>>, vector<2x4x256xf32>,
    return
  }
  func.func @transform_0(%arg0: i32, %arg1: i32) -> (i32, i32, i32) {
    %c0_i32 = arith.constant 0 : i32
    %c0_i32_0 = arith.constant 0 : i32
    return %arg0, %c0_i32, %arg1 : i32, i32, i32
  }
  func.func @transform_1(%arg0: i32, %arg1: i32) -> (i32, i32) {
    %c0_i32 = arith.constant 0 : i32
    %c0_i32_0 = arith.constant 0 : i32
    %c0_i32_1 = arith.constant 0 : i32
    return %c0_i32, %c0_i32_0 : i32, i32
  }
  func.func @transform_2(%arg0: i32, %arg1: i32) -> (i32, i32) {
    %c0_i32 = arith.constant 0 : i32
    %c0_i32_0 = arith.constant 0 : i32
    %c0_i32_1 = arith.constant 0 : i32
    return %c0_i32, %c0_i32_0 : i32, i32
  }
  func.func @transform_3(%arg0: i32, %arg1: i32) -> (i32, i32, i32) {
    %c0_i32 = arith.constant 0 : i32
    %c0_i32_0 = arith.constant 0 : i32
    return %arg0, %c0_i32, %arg1 : i32, i32, i32
  }
}

</mosaic_0001>

<bundles_post_ra>
// kernel: layernorm_nchw.1
= control target key start
LH: loop header
LB: loop body
LE: loop exit
PB: predicated region body
PF: predicated region fallthrough
CT: control target
= control target key end

     0   :  { %v172_v0 = vmov 0   ;;  %vm22_vm0 = vcmask 1043456   ;;  %s220_s1 = inlined_call_operand.vmem [shape: f32[4,1], index: 1, kind: input, shape index: {}]   ;;  %s221_s2 = inlined_call_operand.vmem [shape: f32[4,1], index: 2, kind: input, shape index: {}]   ;;  %s222_s0 = inlined_call_operand.vmem [shape: f32[2,4,256], index: 0, kind: input, shape index: {}]   ;;  %s223_s3 = inlined_call_operand.vmem [shape: f32[2,4,256], index: 3, kind: output, shape index: {}]  }
   0x1   :  { %161 = vset.pattern.permute.xlu0 %v172_v0  ;;  %v113_v1 = vld [vmem:[%s220_s1] sm:$0xf]  ;;  %v15_v4 = vld [vmem:[%s222_s0 + $0x8] sm:$0xff] }
   0x2   :  { %127 = vperm.xlu0 %161, %v113_v1   ;;  %v114_v2 = vld [vmem:[%s221_s2] sm:$0xf]  ;;  %v19_v6 = vcombine.high %v15_v4, %v15_v4  ;;  %v37_v9 = vsel %vm22_vm0, %v15_v4, 0.0 }
   0x3   :  { %v14_v3 = vld [vmem:[%s222_s0] sm:$0xff]  ;;  %v38_v13 = vrot.slane %v37_v9, 4 }
   0x4   :  { %v18_v5 = vcombine.high %v14_v3, %v14_v3  ;;  %v23_v7 = vsel %vm22_vm0, %v14_v3, 0.0  ;;  %v44_v10 = vsel %vm22_vm0, %v19_v6, 0.0 }
   0x5   :  { %v24_v11 = vrot.slane %v23_v7, 4  ;;  %v45_v14 = vrot.slane %v44_v10, 4  ;;  %v39_v17 = vadd.f32 %v38_v13, %v37_v9 }
   0x6   :  { %141 = vperm.xlu0 %161, %v114_v2   ;;  %v30_v8 = vsel %vm22_vm0, %v18_v5, 0.0 }
   0x7   :  { %v31_v12 = vrot.slane %v30_v8, 4  ;;  %v25_v15 = vadd.f32 %v24_v11, %v23_v7  ;;  %v46_v18 = vadd.f32 %v45_v14, %v44_v10  ;;  %v40_v21 = vrot.slane %v39_v17, 2 }
   0x9   :  { %v32_v16 = vadd.f32 %v31_v12, %v30_v8  ;;  %v26_v19 = vrot.slane %v25_v15, 2  ;;  %v47_v22 = vrot.slane %v46_v18, 2  ;;  %v41_v25 = vadd.f32 %v40_v21, %v39_v17 }
   0xa   :  { %v132_v21 = vlaneseq }
   0xb   :  { %v33_v20 = vrot.slane %v32_v16, 2  ;;  %v27_v23 = vadd.f32 %v26_v19, %v25_v15  ;;  %v48_v26 = vadd.f32 %v47_v22, %v46_v18  ;;  %v42_v29 = vrot.slane %v41_v25, 1 }
   0xc   :  { %v173_v19 = vmov 839922192  }
   0xd   :  { %v34_v24 = vadd.f32 %v33_v20, %v32_v16  ;;  %v28_v27 = vrot.slane %v27_v23, 1  ;;  %v49_v30 = vrot.slane %v48_v26, 1  ;;  %v43_v33 = vadd.f32 %v42_v29, %v41_v25 }
   0xe   :  { %v130_v20 = vunpack.c.l.s4 %v173_v19 }
   0xf   :  { %v35_v28 = vrot.slane %v34_v24, 1  ;;  %v29_v31 = vadd.f32 %v28_v27, %v27_v23  ;;  %v50_v34 = vadd.f32 %v49_v30, %v48_v26  ;;  %v53_v37 = vmul.f32 0.25, %v43_v33 }
  0x10   :  { %v131_v25 = vunpack.c.0.s8 %v130_v20  ;;  %v133_v26 = vshrl.u32 %v132_v21, 7 }
  0x11   :  { %v36_v32 = vadd.f32 %v35_v28, %v34_v24  ;;  %v51_v35 = vmul.f32 0.25, %v29_v31  ;;  %v54_v38 = vmul.f32 0.25, %v50_v34 }
  0x12   :  { %v134_v28 = vsub.s32 %v131_v25, %v133_v26 }
  0x13   :  { %v52_v36 = vmul.f32 0.25, %v36_v32  ;;  %v60_v40 = vcombine.low %v53_v37, %v54_v38 }
  0x15   :  { %v59_v39 = vcombine.low %v51_v35, %v52_v36  ;;  %v64_v42 = vsub.f32 %v15_v4, %v60_v40 }
  0x17   :  { %v63_v41 = vsub.f32 %v14_v3, %v59_v39  ;;  %v66_v44 = vmul.f32 %v64_v42, %v64_v42 }
  0x19   :  { %v65_v43 = vmul.f32 %v63_v41, %v63_v41  ;;  %v70_v46 = vcombine.high %v66_v44, %v66_v44  ;;  %v87_v48 = vsel %vm22_vm0, %v66_v44, 0.0 }
  0x1a   :  { %v88_v52 = vrot.slane %v87_v48, 4 }
  0x1b   :  { %v69_v45 = vcombine.high %v65_v43, %v65_v43  ;;  %v73_v47 = vsel %vm22_vm0, %v65_v43, 0.0  ;;  %v94_v51 = vsel %vm22_vm0, %v70_v46, 0.0 }
  0x1c   :  { %v74_v50 = vrot.slane %v73_v47, 4  ;;  %v95_v54 = vrot.slane %v94_v51, 4  ;;  %v89_v56 = vadd.f32 %v88_v52, %v87_v48 }
  0x1d   :  { %v80_v49 = vsel %vm22_vm0, %v69_v45, 0.0 }
  0x1e   :  { %v81_v53 = vrot.slane %v80_v49, 4  ;;  %v75_v55 = vadd.f32 %v74_v50, %v73_v47  ;;  %v96_v58 = vadd.f32 %v95_v54, %v94_v51  ;;  %v90_v60 = vrot.slane %v89_v56, 2 }
  0x20   :  { %v82_v57 = vadd.f32 %v81_v53, %v80_v49  ;;  %v76_v59 = vrot.slane %v75_v55, 2  ;;  %v97_v62 = vrot.slane %v96_v58, 2  ;;  %v91_v0 = vadd.f32 %v90_v60, %v89_v56 }
  0x22   :  { %v83_v61 = vrot.slane %v82_v57, 2  ;;  %v77_v63 = vadd.f32 %v76_v59, %v75_v55  ;;  %v98_v2 = vadd.f32 %v97_v62, %v96_v58  ;;  %v92_v4 = vrot.slane %v91_v0, 1 }
  0x24   :  { %v84_v1 = vadd.f32 %v83_v61, %v82_v57  ;;  %v78_v3 = vrot.slane %v77_v63, 1  ;;  %v99_v6 = vrot.slane %v98_v2, 1  ;;  %v93_v8 = vadd.f32 %v92_v4, %v91_v0 }
  0x26   :  { %v85_v5 = vrot.slane %v84_v1, 1  ;;  %v79_v7 = vadd.f32 %v78_v3, %v77_v63  ;;  %v100_v10 = vadd.f32 %v99_v6, %v98_v2  ;;  %v103_v12 = vmul.f32 0.25, %v93_v8 }
  0x28   :  { %v86_v9 = vadd.f32 %v85_v5, %v84_v1  ;;  %v101_v11 = vmul.f32 0.25, %v79_v7  ;;  %v104_v14 = vmul.f32 0.25, %v100_v10  ;;  %v107_v16 = vadd.f32 1e-06, %v103_v12 }
  0x2a   :  { %v102_v13 = vmul.f32 0.25, %v86_v9  ;;  %v105_v15 = vadd.f32 1e-06, %v101_v11  ;;  %v108_v18 = vadd.f32 1e-06, %v104_v14 }
  0x2c   :  { %v106_v17 = vadd.f32 1e-06, %v102_v13  ;;  %164 = vrsqrt.f32 %v105_v15 }
  0x2d   :  { %166 = vrsqrt.f32 %v107_v16 }
  0x2e   :  { %168 = vrsqrt.f32 %v106_v17 }
  0x2f   :  { %170 = vrsqrt.f32 %v108_v18 }
  0x36   :  { %v165_v22 = vpop.eup %164 }
  0x37   :  { %v167_v23 = vpop.eup %166 }
  0x38   :  { %v169_v24 = vpop.eup %168 }
  0x39   :  { %v171_v27 = vpop.eup %170  ;;  %v119_v29 = vcombine.low %v165_v22, %v169_v24 }
  0x3a   :  { %v120_v30 = vcombine.low %v167_v23, %v171_v27 }
  0x3b   :  { %v123_v32 = vmul.f32 %v119_v29, %v63_v41 }
  0x3c   :  { %v124_v33 = vmul.f32 %v120_v30, %v64_v42 }
  0x81   :  { %v128_v31 = vpop.permute.xlu0 %127 }
  0x82   :  { %v135_v34 = vrot.slane %v128_v31, %v134_v28 }
  0x84   :  { %v137_v36 = vmul.f32 %v135_v34, %v123_v32  ;;  %v138_v37 = vmul.f32 %v135_v34, %v124_v33 }
  0x85   :  { %v142_v35 = vpop.permute.xlu0 %141 }
  0x86   :  { %v149_v38 = vrot.slane %v142_v35, %v134_v28 }
  0x88   :  { %v151_v39 = vadd.f32 %v149_v38, %v137_v36  ;;  %v152_v40 = vadd.f32 %v149_v38, %v138_v37 }
  0x8a   :  { %153 = vst [vmem:[%s223_s3] sm:$0xff] %v151_v39  ;;  %154 = vst [vmem:[%s223_s3 + $0x8] sm:$0xff] %v152_v40 }

</bundles_post_ra>
